<compile_context>
chip_gen: v7x
topology: tpu7x:2x2x1
jax: 0.10.0
libtpu: 0.0.40
codegen_flags: <defaults>
</compile_context>

<pallas_src>
import jax
import jax.numpy as jnp
from jax import lax
from jax.experimental import pallas as pl
from jax.experimental.pallas import tpu as pltpu

# ---------------- model dimensions (consistent with the module) -------------
BATCH = 2
SEQ = 8
VOCAB = 50
TEXT_DIM = 32            # text_encoder.config.hidden_size (synthetic)
BEH_FEATS = 6            # behavioral_features
NUM_LABELS = 3

LANE = 128               # lane width of every packed weight / activation tile
V_PAD = 64               # lanes reserved for the (padded) vocab in the LHS

# packed bf16 weight buffer: four [128, 128] blocks (row offsets are
# multiples of the bf16 sublane tiling of 16)
OFF_W1 = 0               # [emb @ Wp -> cols 0:32 | behavioral W1 -> cols 32:96]
OFF_W2 = 128             # [identity carry (text) | behavioral W2 -> cols 32:64]
OFF_WF = 256             # fusion  [64, 64] -> cols 0:64
OFF_WC = 384             # classifier [64, 3] -> cols 0:3
W_ROWS = 512


# ---------------- Pallas kernel: fully fused forward + loss ------------------
def _fused_kernel(ids_ref, mask_ref, beh_ref, labels_ref, w_ref, b_ref,
                  logits_ref, loss_ref, lhs_ref):
    f32 = jnp.float32
    bf16 = jnp.bfloat16
    bsz, seq = ids_ref.shape

    ids = ids_ref[...]                                     # [B, S] int32
    mask = mask_ref[...].astype(f32)                       # [B, S]

    # ---- synthetic text encoder: masked mean pooling as a matmul LHS -------
    # pool_w[b, v] = sum_s mask[b,s] * [ids[b,s] == v] / max(sum_s mask, 1).
    # Built at full 128-lane width in one broadcast compare; lanes >= VOCAB
    # can never match an id, so they stay exactly zero.
    v_iota = lax.broadcasted_iota(jnp.int32, (bsz, seq, LANE), 2)
    contrib = jnp.where(v_iota == ids[:, :, None], mask[:, :, None], 0.0)
    denom = jnp.maximum(jnp.sum(mask, axis=1, keepdims=True), 1.0)    # [B, 1]
    pool_w = jnp.sum(contrib, axis=1) / denom                         # [B, 128]

    # Behavioral features dropped into lanes [V_PAD, V_PAD+6) with a masked
    # store into VMEM scratch: an implicit, shuffle-free concat feeding the
    # merged stage-1 dot.
    lhs_ref[...] = pool_w
    lhs_ref[:, V_PAD:V_PAD + BEH_FEATS] = beh_ref[...].astype(f32)
    lhs1 = lhs_ref[...]

    col = lax.broadcasted_iota(jnp.int32, (bsz, LANE), 1)

    # ---- stage 1: pooled-embedding@Wp (folded) + behavioral layer 1 --------
    # lanes [0,32)  -> tanh : text_features (pooler)
    # lanes [32,96) -> relu : behavioral hidden-1
    y1 = jnp.dot(lhs1.astype(bf16), w_ref[OFF_W1:OFF_W2, :],
                 preferred_element_type=f32) + b_ref[0:1, :]
    a1 = jnp.where(col < TEXT_DIM, jnp.tanh(y1), jnp.maximum(y1, 0.0))

    # ---- stage 2: behavioral layer 2 (relu); text carried via identity -----
    y2 = jnp.dot(a1.astype(bf16), w_ref[OFF_W2:OFF_WF, :],
                 preferred_element_type=f32) + b_ref[1:2, :]
    a2 = jnp.where(col < TEXT_DIM, y2, jnp.maximum(y2, 0.0))
    # lanes [0,32) = text_features, [32,64) = behavioral hidden-2, rest 0

    # ---- stage 3: fusion layer on the implicit concat ----------------------
    y3 = jnp.dot(a2.astype(bf16), w_ref[OFF_WF:OFF_WC, :],
                 preferred_element_type=f32) + b_ref[2:3, :]
    a3 = jnp.maximum(y3, 0.0)                              # lanes [0,64) fused

    # ---- stage 4: classifier ------------------------------------------------
    logits = jnp.dot(a3.astype(bf16), w_ref[OFF_WC:W_ROWS, :],
                     preferred_element_type=f32) + b_ref[3:4, :]      # [B, 128]
    logits_ref[...] = logits[:, :NUM_LABELS].astype(logits_ref.dtype)

    # ---- fused CrossEntropyLoss (mean over the batch, all math in f32) -----
    cls = col < NUM_LABELS
    z = jnp.where(cls, logits, -1e30)
    m = jnp.max(z, axis=1, keepdims=True)
    e = jnp.where(cls, jnp.exp(z - m), 0.0)
    lse = m + jnp.log(jnp.sum(e, axis=1, keepdims=True))              # [B, 1]
    lab_onehot = (col == labels_ref[...]).astype(f32)                 # [B, 128]
    picked = jnp.sum(lab_onehot * logits, axis=1, keepdims=True)      # [B, 1]
    nll = lse - picked
    loss_ref[...] = jnp.sum(nll, axis=0, keepdims=True) * (1.0 / bsz)


# ---------------- parameter init (deterministic, synthetic) ------------------
def init_params(key):
    ks = jax.random.split(key, 12)
    s = 0.05
    return {
        "emb": jax.random.normal(ks[0], (VOCAB, TEXT_DIM), jnp.float32) * s,
        "wp":  jax.random.normal(ks[1], (TEXT_DIM, TEXT_DIM), jnp.float32) * s,
        "bp":  jnp.zeros((TEXT_DIM,), jnp.float32),
        "w1":  jax.random.normal(ks[2], (BEH_FEATS, 64), jnp.float32) * s,
        "b1":  jax.random.normal(ks[3], (64,), jnp.float32) * s,
        "w2":  jax.random.normal(ks[4], (64, 32), jnp.float32) * s,
        "b2":  jax.random.normal(ks[5], (32,), jnp.float32) * s,
        "wf":  jax.random.normal(ks[6], (TEXT_DIM + 32, 64), jnp.float32) * s,
        "bf":  jax.random.normal(ks[7], (64,), jnp.float32) * s,
        "wc":  jax.random.normal(ks[8], (64, NUM_LABELS), jnp.float32) * s,
        "bc":  jnp.zeros((NUM_LABELS,), jnp.float32),
    }


def pack_params(raw):
    """Pack all weights into ONE bf16 [512,128] buffer + ONE f32 [8,128] bias tile.

    The pooler weight is folded into the embedding table (emb @ Wp) so the
    text branch needs a single MXU pass at stage 1.
    """
    f32 = jnp.float32
    emb_p = raw["emb"] @ raw["wp"]                        # [VOCAB, TEXT_DIM]

    w = jnp.zeros((W_ROWS, LANE), f32)
    # stage 1 block: pooled-embedding (rows = vocab lanes) | behavioral W1
    w = w.at[OFF_W1:OFF_W1 + VOCAB, 0:TEXT_DIM].set(emb_p)
    w = w.at[OFF_W1 + V_PAD:OFF_W1 + V_PAD + BEH_FEATS,
             TEXT_DIM:TEXT_DIM + 64].set(raw["w1"])
    # stage 2 block: identity pass-through for text | behavioral W2
    w = w.at[OFF_W2:OFF_W2 + TEXT_DIM, 0:TEXT_DIM].set(
        jnp.eye(TEXT_DIM, dtype=f32))
    w = w.at[OFF_W2 + TEXT_DIM:OFF_W2 + TEXT_DIM + 64,
             TEXT_DIM:TEXT_DIM + 32].set(raw["w2"])
    # stage 3 block: fusion on implicit concat [text | h2] -> lanes 0:64
    w = w.at[OFF_WF:OFF_WF + TEXT_DIM + 32, 0:64].set(raw["wf"])
    # stage 4 block: classifier
    w = w.at[OFF_WC:OFF_WC + 64, 0:NUM_LABELS].set(raw["wc"])

    b = jnp.zeros((8, LANE), f32)
    b = b.at[0, 0:TEXT_DIM].set(raw["bp"])
    b = b.at[0, TEXT_DIM:TEXT_DIM + 64].set(raw["b1"])
    b = b.at[1, TEXT_DIM:TEXT_DIM + 32].set(raw["b2"])
    b = b.at[2, 0:64].set(raw["bf"])
    b = b.at[3, 0:NUM_LABELS].set(raw["bc"])
    # weights go to bf16 (MXU-native, half the DMA); biases stay f32 (added
    # to the f32 accumulators).
    return {"w": w.astype(jnp.bfloat16), "b": b}


# ---------------- forward: single fused kernel, no host-side glue ------------
@jax.jit
def _forward_impl(w_packed, b_packed, input_ids, attention_mask,
                  behavioral_features, labels):
    batch = input_ids.shape[0]
    vmem = pl.BlockSpec(memory_space=pltpu.MemorySpace.VMEM)
    flops = 2 * batch * 4 * LANE * LANE
    bytes_accessed = (W_ROWS * LANE * 2 + 8 * LANE * 4
                      + input_ids.size * 4 + attention_mask.size * 4
                      + behavioral_features.size * 4 + batch * 4
                      + batch * NUM_LABELS * 4 + 4)
    logits, loss = pl.pallas_call(
        _fused_kernel,
        out_shape=(jax.ShapeDtypeStruct((batch, NUM_LABELS), jnp.float32),
                   jax.ShapeDtypeStruct((1, 1), jnp.float32)),
        in_specs=[vmem] * 6,
        out_specs=(vmem, vmem),
        scratch_shapes=[pltpu.VMEM((batch, LANE), jnp.float32)],
        cost_estimate=pl.CostEstimate(flops=flops,
                                      transcendentals=batch * (TEXT_DIM + 4),
                                      bytes_accessed=bytes_accessed),
    )(input_ids.astype(jnp.int32),
      attention_mask,
      behavioral_features.astype(jnp.float32),
      labels.reshape(batch, 1).astype(jnp.int32),
      w_packed, b_packed)
    return logits, loss[0, 0]


def modelo_multimodal_forward(params, input_ids, attention_mask,
                              behavioral_features, labels=None):
    lab = labels if labels is not None else jnp.zeros(
        (input_ids.shape[0],), jnp.int32)
    logits, loss = _forward_impl(params["w"], params["b"], input_ids,
                                 attention_mask, behavioral_features, lab)
    outputs = {"logits": logits}
    if labels is not None:
        outputs["loss"] = loss
    return outputs


# ---------------- plain-JAX reference (same synthetic semantics) -------------
def _reference_forward(raw, input_ids, attention_mask, behavioral_features, labels):
    emb = raw["emb"][input_ids]                                    # [B, S, H]
    m = attention_mask.astype(jnp.float32)[..., None]
    pooled = (emb * m).sum(axis=1) / jnp.maximum(m.sum(axis=1), 1.0)
    text = jnp.tanh(pooled @ raw["wp"] + raw["bp"])
    h = jax.nn.relu(behavioral_features @ raw["w1"] + raw["b1"])
    h = jax.nn.relu(h @ raw["w2"] + raw["b2"])
    fused = jax.nn.relu(jnp.concatenate([text, h], axis=1) @ raw["wf"] + raw["bf"])
    logits = fused @ raw["wc"] + raw["bc"]
    logp = jax.nn.log_softmax(logits, axis=-1)
    loss = -jnp.take_along_axis(logp, labels[:, None], axis=-1)[:, 0].mean()
    return logits, loss


if __name__ == "__main__":
    key = jax.random.PRNGKey(0)
    kp, ki, kb, kl = jax.random.split(key, 4)

    raw = init_params(kp)
    params = pack_params(raw)

    input_ids = jax.random.randint(ki, (BATCH, SEQ), 0, VOCAB, dtype=jnp.int32)
    attention_mask = jnp.ones((BATCH, SEQ), dtype=jnp.int32)
    behavioral_features = jax.random.normal(kb, (BATCH, BEH_FEATS), jnp.float32)
    labels = jax.random.randint(kl, (BATCH,), 0, NUM_LABELS, dtype=jnp.int32)

    out = modelo_multimodal_forward(params, input_ids, attention_mask,
                                    behavioral_features, labels)
    jax.block_until_ready(out["logits"])
    jax.block_until_ready(out["loss"])

    assert out["logits"].shape == (BATCH, NUM_LABELS)
    assert bool(jnp.isfinite(out["loss"]))

    # sanity check against the straightforward JAX implementation of the same
    # synthetic-encoder semantics (loose tolerance: bf16 MXU vs f32 XLA paths).
    ref_logits, ref_loss = _reference_forward(raw, input_ids, attention_mask,
                                              behavioral_features, labels)
    assert jnp.allclose(out["logits"], ref_logits, atol=1e-2, rtol=1e-2)
    assert jnp.allclose(out["loss"], ref_loss, atol=1e-2, rtol=1e-2)

    print("KERNEL_OK")
</pallas_src>

<mosaic_0001>
module attributes {stable_mosaic.version = 11 : i64} {
  func.func @_fused_kernel(%arg0: memref<2x8xi32, #tpu.memory_space<vmem>>, %arg1: memref<2x8xi32, #tpu.memory_space<vmem>>, %arg2: memref<2x6xf32, #tpu.memory_space<vmem>>, %arg3: memref<2x1xi32, #tpu.memory_space<vmem>>, %arg4: memref<512x128xbf16, #tpu.memory_space<vmem>>, %arg5: memref<8x128xf32, #tpu.memory_space<vmem>>, %arg6: memref<2x3xf32, #tpu.memory_space<vmem>>, %arg7: memref<1x1xf32, #tpu.memory_space<vmem>>, %arg8: memref<2x128xf32, #tpu.memory_space<vmem>>) attributes {dimension_semantics = [], scalar_prefetch = 0 : i64, scratch_operands = 1 : i64, tpu.core_type = #tpu.core_type<tc>} {
    %c0 = arith.constant 0 : index
    %c0_0 = arith.constant 0 : index
    %0 = vector.load %arg0[%c0, %c0_0] : memref<2x8xi32, #tpu.memory_space<vmem>>, vector<2x8xi32>
    %c0_1 = arith.constant 0 : index
    %c0_2 = arith.constant 0 : index
    %1 = vector.load %arg1[%c0_1, %c0_2] : memref<2x8xi32, #tpu.memory_space<vmem>>, vector<2x8xi32>
    %2 = arith.sitofp %1 : vector<2x8xi32> to vector<2x8xf32>
    %3 = tpu.iota {dimensions = array<i32: 2>} : vector<2x8x128xi32>
    %4 = vector.shape_cast %0 : vector<2x8xi32> to vector<2x8x1xi32>
    %5 = vector.broadcast %4 : vector<2x8x1xi32> to vector<2x8x128xi32>
    %6 = arith.cmpi eq, %3, %5 : vector<2x8x128xi32>
    %7 = vector.shape_cast %2 : vector<2x8xf32> to vector<2x8x1xf32>
    %cst = arith.constant 0.000000e+00 : f32
    %8 = vector.shape_cast %7 : vector<2x8x1xf32> to vector<2x8x1xf32>
    %9 = vector.broadcast %8 : vector<2x8x1xf32> to vector<2x8x128xf32>
    %10 = vector.broadcast %cst : f32 to vector<2x8x128xf32>
    %11 = arith.select %6, %9, %10 : vector<2x8x128xi1>, vector<2x8x128xf32>
    %cst_3 = arith.constant dense<0.000000e+00> : vector<2xf32>
    %12 = vector.multi_reduction <add>, %2, %cst_3 [1] : vector<2x8xf32> to vector<2xf32>
    %13 = vector.shape_cast %12 : vector<2xf32> to vector<2x1xf32>
    %cst_4 = arith.constant 1.000000e+00 : f32
    %14 = vector.broadcast %cst_4 : f32 to vector<2x1xf32>
    %15 = arith.maximumf %13, %14 : vector<2x1xf32>
    %cst_5 = arith.constant dense<0.000000e+00> : vector<2x128xf32>
    %16 = vector.multi_reduction <add>, %11, %cst_5 [1] : vector<2x8x128xf32> to vector<2x128xf32>
    %17 = vector.broadcast %15 : vector<2x1xf32> to vector<2x128xf32>
    %18 = arith.divf %16, %17 : vector<2x128xf32>
    %c0_6 = arith.constant 0 : index
    %c0_7 = arith.constant 0 : index
    %19 = vector.load %arg8[%c0_6, %c0_7] : memref<2x128xf32, #tpu.memory_space<vmem>>, vector<2x128xf32>
    tpu.vector_store %arg8[%c0_6, %c0_7], %18 {strides = array<i32>} : memref<2x128xf32, #tpu.memory_space<vmem>>, vector<2x128xf32>,
    %c0_8 = arith.constant 0 : index
    %c0_9 = arith.constant 0 : index
    %20 = vector.load %arg2[%c0_8, %c0_9] : memref<2x6xf32, #tpu.memory_space<vmem>>, vector<2x6xf32>
    %c0_10 = arith.constant 0 : index
    %c64 = arith.constant 64 : index
    %21 = vector.load %arg8[%c0_10, %c64] : memref<2x128xf32, #tpu.memory_space<vmem>>, vector<2x6xf32>
    tpu.vector_store %arg8[%c0_10, %c64], %20 {strides = array<i32>} : memref<2x128xf32, #tpu.memory_space<vmem>>, vector<2x6xf32>,
    %c0_11 = arith.constant 0 : index
    %c0_12 = arith.constant 0 : index
    %22 = vector.load %arg8[%c0_11, %c0_12] : memref<2x128xf32, #tpu.memory_space<vmem>>, vector<2x128xf32>
    %23 = tpu.iota {dimensions = array<i32: 1>} : vector<2x128xi32>
    %24 = arith.truncf %22 : vector<2x128xf32> to vector<2x128xbf16>
    %c0_13 = arith.constant 0 : index
    %c0_14 = arith.constant 0 : index
    %25 = vector.load %arg4[%c0_13, %c0_14] : memref<512x128xbf16, #tpu.memory_space<vmem>>, vector<128x128xbf16>
    %cst_15 = arith.constant dense<0.000000e+00> : vector<2x128xf32>
    %26 = tpu.matmul %24, %25, %cst_15 {dimension_numbers = #tpu.dot_dimension_numbers<[1], [0], [0], [1], [0, 0, 1, 1], [], []>} : vector<2x128xbf16>, vector<128x128xbf16>, vector<2x128xf32> -> vector<2x128xf32>
    %c0_16 = arith.constant 0 : index
    %c0_17 = arith.constant 0 : index
    %27 = vector.load %arg5[%c0_16, %c0_17] : memref<8x128xf32, #tpu.memory_space<vmem>>, vector<1x128xf32>
    %28 = vector.broadcast %27 : vector<1x128xf32> to vector<2x128xf32>
    %29 = arith.addf %26, %28 : vector<2x128xf32>
    %c32_i32 = arith.constant 32 : i32
    %30 = vector.broadcast %c32_i32 : i32 to vector<2x128xi32>
    %31 = arith.cmpi slt, %23, %30 : vector<2x128xi32>
    %32 = math.tanh %29 : vector<2x128xf32>
    %cst_18 = arith.constant 0.000000e+00 : f32
    %33 = vector.broadcast %cst_18 : f32 to vector<2x128xf32>
    %34 = arith.maximumf %29, %33 : vector<2x128xf32>
    %35 = arith.select %31, %32, %34 : vector<2x128xi1>, vector<2x128xf32>
    %36 = arith.truncf %35 : vector<2x128xf32> to vector<2x128xbf16>
    %c128 = arith.constant 128 : index
    %c0_19 = arith.constant 0 : index
    %37 = vector.load %arg4[%c128, %c0_19] : memref<512x128xbf16, #tpu.memory_space<vmem>>, vector<128x128xbf16>
    %cst_20 = arith.constant dense<0.000000e+00> : vector<2x128xf32>
    %38 = tpu.matmul %36, %37, %cst_20 {dimension_numbers = #tpu.dot_dimension_numbers<[1], [0], [0], [1], [0, 0, 1, 1], [], []>} : vector<2x128xbf16>, vector<128x128xbf16>, vector<2x128xf32> -> vector<2x128xf32>
    %c1 = arith.constant 1 : index
    %c0_21 = arith.constant 0 : index
    %39 = vector.load %arg5[%c1, %c0_21] : memref<8x128xf32, #tpu.memory_space<vmem>>, vector<1x128xf32>
    %40 = vector.broadcast %39 : vector<1x128xf32> to vector<2x128xf32>
    %41 = arith.addf %38, %40 : vector<2x128xf32>
    %c32_i32_22 = arith.constant 32 : i32
    %42 = vector.broadcast %c32_i32_22 : i32 to vector<2x128xi32>
    %43 = arith.cmpi slt, %23, %42 : vector<2x128xi32>
    %cst_23 = arith.constant 0.000000e+00 : f32
    %44 = vector.broadcast %cst_23 : f32 to vector<2x128xf32>
    %45 = arith.maximumf %41, %44 : vector<2x128xf32>
    %46 = arith.select %43, %41, %45 : vector<2x128xi1>, vector<2x128xf32>
    %47 = arith.truncf %46 : vector<2x128xf32> to vector<2x128xbf16>
    %c256 = arith.constant 256 : index
    %c0_24 = arith.constant 0 : index
    %48 = vector.load %arg4[%c256, %c0_24] : memref<512x128xbf16, #tpu.memory_space<vmem>>, vector<128x128xbf16>
    %cst_25 = arith.constant dense<0.000000e+00> : vector<2x128xf32>
    %49 = tpu.matmul %47, %48, %cst_25 {dimension_numbers = #tpu.dot_dimension_numbers<[1], [0], [0], [1], [0, 0, 1, 1], [], []>} : vector<2x128xbf16>, vector<128x128xbf16>, vector<2x128xf32> -> vector<2x128xf32>
    %c2 = arith.constant 2 : index
    %c0_26 = arith.constant 0 : index
    %50 = vector.load %arg5[%c2, %c0_26] : memref<8x128xf32, #tpu.memory_space<vmem>>, vector<1x128xf32>
    %51 = vector.broadcast %50 : vector<1x128xf32> to vector<2x128xf32>
    %52 = arith.addf %49, %51 : vector<2x128xf32>
    %cst_27 = arith.constant 0.000000e+00 : f32
    %53 = vector.broadcast %cst_27 : f32 to vector<2x128xf32>
    %54 = arith.maximumf %52, %53 : vector<2x128xf32>
    %55 = arith.truncf %54 : vector<2x128xf32> to vector<2x128xbf16>
    %c384 = arith.constant 384 : index
    %c0_28 = arith.constant 0 : index
    %56 = vector.load %arg4[%c384, %c0_28] : memref<512x128xbf16, #tpu.memory_space<vmem>>, vector<128x128xbf16>
    %cst_29 = arith.constant dense<0.000000e+00> : vector<2x128xf32>
    %57 = tpu.matmul %55, %56, %cst_29 {dimension_numbers = #tpu.dot_dimension_numbers<[1], [0], [0], [1], [0, 0, 1, 1], [], []>} : vector<2x128xbf16>, vector<128x128xbf16>, vector<2x128xf32> -> vector<2x128xf32>
    %c3 = arith.constant 3 : index
    %c0_30 = arith.constant 0 : index
    %58 = vector.load %arg5[%c3, %c0_30] : memref<8x128xf32, #tpu.memory_space<vmem>>, vector<1x128xf32>
    %59 = vector.broadcast %58 : vector<1x128xf32> to vector<2x128xf32>
    %60 = arith.addf %57, %59 : vector<2x128xf32>
    %61 = vector.extract_strided_slice %60 {offsets = [0, 0], sizes = [2, 3], strides = [1, 1]} : vector<2x128xf32> to vector<2x3xf32>
    %c0_31 = arith.constant 0 : index
    %c0_32 = arith.constant 0 : index
    %62 = vector.load %arg6[%c0_31, %c0_32] : memref<2x3xf32, #tpu.memory_space<vmem>>, vector<2x3xf32>
    tpu.vector_store %arg6[%c0_31, %c0_32], %61 {strides = array<i32>} : memref<2x3xf32, #tpu.memory_space<vmem>>, vector<2x3xf32>,
    %c3_i32 = arith.constant 3 : i32
    %63 = vector.broadcast %c3_i32 : i32 to vector<2x128xi32>
    %64 = arith.cmpi slt, %23, %63 : vector<2x128xi32>
    %cst_33 = arith.constant -1.000000e+30 : f32
    %65 = vector.broadcast %cst_33 : f32 to vector<2x128xf32>
    %66 = arith.select %64, %60, %65 : vector<2x128xi1>, vector<2x128xf32>
    %cst_34 = arith.constant dense<0xFF800000> : vector<2xf32>
    %67 = vector.multi_reduction <maximumf>, %66, %cst_34 [1] : vector<2x128xf32> to vector<2xf32>
    %68 = vector.shape_cast %67 : vector<2xf32> to vector<2x1xf32>
    %69 = vector.broadcast %68 : vector<2x1xf32> to vector<2x128xf32>
    %70 = arith.subf %66, %69 : vector<2x128xf32>
    %71 = math.exp %70 : vector<2x128xf32>
    %cst_35 = arith.constant 0.000000e+00 : f32
    %72 = vector.broadcast %cst_35 : f32 to vector<2x128xf32>
    %73 = arith.select %64, %71, %72 : vector<2x128xi1>, vector<2x128xf32>
    %cst_36 = arith.constant dense<0.000000e+00> : vector<2xf32>
    %74 = vector.multi_reduction <add>, %73, %cst_36 [1] : vector<2x128xf32> to vector<2xf32>
    %75 = vector.shape_cast %74 : vector<2xf32> to vector<2x1xf32>
    %76 = math.log %75 : vector<2x1xf32>
    %77 = arith.addf %68, %76 : vector<2x1xf32>
    %c0_37 = arith.constant 0 : index
    %c0_38 = arith.constant 0 : index
    %78 = vector.load %arg3[%c0_37, %c0_38] : memref<2x1xi32, #tpu.memory_space<vmem>>, vector<2x1xi32>
    %79 = vector.broadcast %78 : vector<2x1xi32> to vector<2x128xi32>
    %80 = arith.cmpi eq, %23, %79 : vector<2x128xi32>
    %81 = arith.extui %80 : vector<2x128xi1> to vector<2x128xi32>
    %82 = arith.sitofp %81 : vector<2x128xi32> to vector<2x128xf32>
    %83 = arith.mulf %82, %60 : vector<2x128xf32>
    %cst_39 = arith.constant dense<0.000000e+00> : vector<2xf32>
    %84 = vector.multi_reduction <add>, %83, %cst_39 [1] : vector<2x128xf32> to vector<2xf32>
    %85 = vector.shape_cast %84 : vector<2xf32> to vector<2x1xf32>
    %86 = arith.subf %77, %85 : vector<2x1xf32>
    %cst_40 = arith.constant dense<0.000000e+00> : vector<1xf32>
    %87 = vector.multi_reduction <add>, %86, %cst_40 [0] : vector<2x1xf32> to vector<1xf32>
    %88 = vector.shape_cast %87 : vector<1xf32> to vector<1x1xf32>
    %cst_41 = arith.constant 5.000000e-01 : f32
    %89 = vector.broadcast %cst_41 : f32 to vector<1x1xf32>
    %90 = arith.mulf %88, %89 : vector<1x1xf32>
    %c0_42 = arith.constant 0 : index
    %c0_43 = arith.constant 0 : index
    %91 = vector.load %arg7[%c0_42, %c0_43] : memref<1x1xf32, #tpu.memory_space<vmem>>, vector<1x1xf32>
    tpu.vector_store %arg7[%c0_42, %c0_43], %90 {strides = array<i32>} : memref<1x1xf32, #tpu.memory_space<vmem>>, vector<1x1xf32>,
    return
  }
}

</mosaic_0001>

<bundles_post_ra>
// kernel: _forward_impl.1
= control target key start
LH: loop header
LB: loop body
LE: loop exit
PB: predicated region body
PF: predicated region fallthrough
CT: control target
= control target key end

     0   :  { %13 = vsyncpa [#allocation4], 0  ;;  %s1081_s0 = inlined_call_operand.vmem [shape: s32[2,8], index: 0, kind: input, shape index: {}]   ;;  %s1082_s1 = inlined_call_operand.vmem [shape: s32[2,8], index: 1, kind: input, shape index: {}]   ;;  %s1083_s2 = inlined_call_operand.vmem [shape: f32[2,6], index: 2, kind: input, shape index: {}]   ;;  %s1084_s3 = inlined_call_operand.vmem [shape: s32[2,1], index: 3, kind: input, shape index: {}]   ;;  %s1085_s4 = inlined_call_operand.hbm [shape: bf16[512,128], index: 4, kind: input, shape index: {}]   ;;  %s1086_s5 = inlined_call_operand.vmem [shape: f32[8,128], index: 5, kind: input, shape index: {}]   ;;  %s1087_s6 = inlined_call_operand.hbm [shape: f32[2,3], index: 6, kind: output, shape index: {0}]   ;;  %s1088_s7 = inlined_call_operand.hbm [shape: f32[1,1], index: 7, kind: output, shape index: {1}]  }
   0x1   :  { %14 = vsyncpa [#allocation5], 0 }
   0x2   :  { %15 = vsyncpa [#allocation8], 0  ;;  %s911_s24 = smov [#allocation3]   ;;  %s839_s28 = scalar_lea.hbm %s1085_s4, 4096 }
   0x3   :  { %s29_s25 = sshll.u32 %s911_s24, 4  ;;  %p840_p0 = scmp.ne.s32.totalorder %s1085_s4, %s839_s28  ;;  %s30_s25 = int_to_ptr.vmem [resolvable:$true] %s29_s25 }
   0x4   :  { %p843_p1 = scmp.lt.u32.totalorder %s839_s28, %s1085_s4 }
   0x6   :  { %p845_p2 = pnand %p843_p1, %p840_p0 }
   0x8   :  { %848 = shalt.err (!%p845_p2)
}
   0x9   :  { %s849_s10 = scalar_lea.vmem %s30_s25, 4096  ;;  %p854_p4 = scmp.lt.s32.totalorder %s30_s25, %s30_s25 }
   0xa   :  { %p850_p3 = scmp.ne.s32.totalorder %s30_s25, %s849_s10  ;;  %p855_p5 = scmp.lt.s32.totalorder %s849_s10, %s849_s10 }
   0xc   :  { %p856_p6 = por %p855_p5, %p854_p4 }
   0xe   :  { %p857_p7 = pnand %p856_p6, %p850_p3 }
  0x10   :  { %860 = shalt.err (!%p857_p7)
}
  0x11   :  { %s912_s11 = smov 64   ;;  %s913_s12 = smov 4  }
  0x12   :  { %35 = dma.hbm_to_vmem [thread:$0]  %s1085_s4, 4096, %s30_s25, [#allocation4], %s912_s11, %s912_s11, %s913_s12  }
  0x13   :  { %905 = dma.done.wait [#allocation4], 4096  }
  0x14   :  { %906 = vsyncadd [#allocation4], 4294963200  ;;  %v45_v0 = vlaneseq  ;;  %v43_v4 = vld [vmem:[%s1082_s1] sm:$0x3]  ;;  %vm79_vm0 = vcmask 58368   ;;  %v797_v12 = vld [vmem:[#allocation3] sm:$0xff]  }
  0x15   :  { %v42_v5 = vld [vmem:[%s1081_s0] sm:$0x3]  ;;  %v44_v6 = vcvt.s32.f32 %v43_v4  ;;  %v914_v13 = vmov 0.0   ;;  %v798_v15 = vld [vmem:[#allocation3 + $0x8] sm:$0xff]   ;;  %v799_v16 = vld [vmem:[#allocation3 + $0x10] sm:$0xff]   ;;  %vm915_vm1 = vmmov 0  }
  0x16   :  { %v48_v1 = vshrl.u32 %v45_v0, 7  ;;  %v111_v11 = vld [vmem:[%s1083_s2] sm:$0x3]  ;;  %708 = vmatprep.subr.bf16.mxu0 %v914_v13  ;;  %728 = vmatprep.subr.bf16.mxu1 %v914_v13  ;;  %v801_v18 = vld [vmem:[#allocation3 + $0x20] sm:$0xff]   ;;  %v802_v19 = vld [vmem:[#allocation3 + $0x28] sm:$0xff]   ;;  %v1000_v28 = vand.u32 127, %v45_v0 }
  0x17   :  { %v80_v8 = vsel %vm79_vm0, %v44_v6, 0.0  ;;  %709 = vmatpush3.bf16.msra.mxu0 %v797_v12  ;;  %v800_v17 = vld [vmem:[#allocation3 + $0x18] sm:$0xff]   ;;  %v803_v20 = vld [vmem:[#allocation3 + $0x30] sm:$0xff]   ;;  %724 = vmatprep.mubr.msk.bf16.mxu0 %vm915_vm1, %v914_v13  ;;  %v805_v22 = vld [vmem:[#allocation3 + $0x40] sm:$0xff]   ;;  %vm107_vm4 = vcmask 1041409   ;;  %vm116_vm5 = vcmask 566784  }
  0x18   :  { %v49_v2 = vsub.s32 0, %v48_v1  ;;  %v56_v3 = vsub.s32 1, %v48_v1  ;;  %81 = vadd.xlane.f32.xlu0 %v80_v8  ;;  %710 = vmatprep.subr.bf16.mxu0 %v914_v13  ;;  %v804_v21 = vld [vmem:[#allocation3 + $0x38] sm:$0xff]   ;;  %v806_v23 = vld [vmem:[#allocation3 + $0x48] sm:$0xff]   ;;  %v807_v24 = vld [vmem:[#allocation3 + $0x50] sm:$0xff]   ;;  %vm229_vm6 = vcmp.lt.s32.totalorder %v1000_v28, 32 }
  0x19   :  { %744 = vmatprep.mubr.msk.bf16.mxu1 %vm915_vm1, %v914_v13  ;;  %729 = vmatpush3.bf16.msra.mxu1 %v805_v22  ;;  %v808_v25 = vld [vmem:[#allocation3 + $0x58] sm:$0xff]   ;;  %v809_v57 = vld [vmem:[#allocation3 + $0x60] sm:$0xff]   ;;  %v810_v58 = vld [vmem:[#allocation3 + $0x68] sm:$0xff]   ;;  %vm568_vm8 = vcmp.lt.s32.totalorder %v1000_v28, 3  ;;  %vm566_vm9 = vcmask 17408   ;;  %vm570_vm10 = vcmask 1041408  }
  0x1a   :  { %v50_v7 = vrot.slane %v42_v5, %v49_v2  ;;  %v73_v9 = vrot.slane %v44_v6, %v56_v3  ;;  %v66_v10 = vrot.slane %v44_v6, %v49_v2  ;;  %v57_v14 = vrot.slane %v42_v5, %v56_v3  ;;  %730 = vmatprep.subr.bf16.mxu1 %v914_v13  ;;  %v811_v59 = vld [vmem:[#allocation3 + $0x70] sm:$0xff]   ;;  %v812_v60 = vld [vmem:[#allocation3 + $0x78] sm:$0xff]   ;;  %v813_v61 = vld [vmem:[#allocation3 + $0x80] sm:$0xff]  }
  0x1b   :  { %711 = vmatpush3.bf16.msra.mxu0 %v798_v15  ;;  %v814_v62 = vld [vmem:[#allocation3 + $0x88] sm:$0xff]   ;;  %v815_v63 = vld [vmem:[#allocation3 + $0x90] sm:$0xff]   ;;  %v816_v0 = vld [vmem:[#allocation3 + $0x98] sm:$0xff]  }
  0x1c   :  { %52 = vbcast.lane.b32.xlu1 %v50_v7, 256  ;;  %712 = vmatprep.subr.bf16.mxu0 %v914_v13  ;;  %v817_v1 = vld [vmem:[#allocation3 + $0xa0] sm:$0xff]   ;;  %v818_v2 = vld [vmem:[#allocation3 + $0xa8] sm:$0xff]   ;;  %v635_v3 = vld [vmem:[%s1086_s5] ss:$0 sm:$0xff] }
  0x1d   :  { %731 = vmatpush3.bf16.msra.mxu1 %v806_v23  ;;  %v820_v15 = vld [vmem:[#allocation3 + $0xb8] sm:$0xff]  }
  0x1e   :  { %732 = vmatprep.subr.bf16.mxu1 %v914_v13  ;;  %v644_v22 = vld [vmem:[%s1086_s5 + $0x1] ss:$0 sm:$0xff] }
  0x1f   :  { %713 = vmatpush3.bf16.msra.mxu0 %v799_v16  ;;  %v821_v16 = vld [vmem:[#allocation3 + $0xc0] sm:$0xff]  }
  0x20   :  { %75 = vbcast.lane.b32.xlu1 %v73_v9, 256  ;;  %714 = vmatprep.subr.bf16.mxu0 %v914_v13 }
  0x21   :  { %733 = vmatpush3.bf16.msra.mxu1 %v807_v24 }
  0x22   :  { %734 = vmatprep.subr.bf16.mxu1 %v914_v13 }
  0x23   :  { %715 = vmatpush3.bf16.msra.mxu0 %v800_v17  ;;  %v822_v17 = vld [vmem:[#allocation3 + $0xc8] sm:$0xff]  }
  0x24   :  { %68 = vbcast.lane.b32.xlu1 %v66_v10, 256  ;;  %716 = vmatprep.subr.bf16.mxu0 %v914_v13 }
  0x25   :  { %735 = vmatpush3.bf16.msra.mxu1 %v808_v25 }
  0x26   :  { %736 = vmatprep.subr.bf16.mxu1 %v914_v13 }
  0x27   :  { %717 = vmatpush3.bf16.msra.mxu0 %v801_v18  ;;  %v823_v18 = vld [vmem:[#allocation3 + $0xd0] sm:$0xff]  }
  0x28   :  { %113 = vrot.lane.b32.xlu1 %v111_v11, %s912_s11  ;;  %718 = vmatprep.subr.bf16.mxu0 %v914_v13 }
  0x29   :  { %737 = vmatpush3.bf16.msra.mxu1 %v809_v57 }
  0x2a   :  { %738 = vmatprep.subr.bf16.mxu1 %v914_v13 }
  0x2b   :  { %719 = vmatpush3.bf16.msra.mxu0 %v802_v19  ;;  %v824_v19 = vld [vmem:[#allocation3 + $0xd8] sm:$0xff]  }
  0x2c   :  { %720 = vmatprep.subr.bf16.mxu0 %v914_v13 }
  0x2d   :  { %739 = vmatpush3.bf16.msra.mxu1 %v810_v58 }
  0x2e   :  { %59 = vbcast.lane.b32.xlu0 %v57_v14, 256  ;;  %740 = vmatprep.subr.bf16.mxu1 %v914_v13  ;;  %v819_v14 = vld [vmem:[#allocation3 + $0xb0] sm:$0xff]  }
  0x2f   :  { %721 = vmatpush3.bf16.msra.mxu0 %v803_v20  ;;  %v825_v20 = vld [vmem:[#allocation3 + $0xe0] sm:$0xff]  }
  0x30   :  { %722 = vmatprep.subr.bf16.mxu0 %v914_v13 }
  0x31   :  { %741 = vmatpush3.bf16.msra.mxu1 %v811_v59 }
  0x32   :  { %742 = vmatprep.subr.bf16.mxu1 %v914_v13 }
  0x33   :  { %723 = vmatpush3.bf16.msra.mxu0 %v804_v21  ;;  %v826_v21 = vld [vmem:[#allocation3 + $0xe8] sm:$0xff]  }
  0x34   :  { %748 = vmatprep.subr.bf16.mxu0 %v914_v13 }
  0x35   :  { %743 = vmatpush3.bf16.msra.mxu1 %v812_v60 }
  0x36   :  { %768 = vmatprep.subr.bf16.mxu1 %v914_v13 }
  0x8e   :  { %v53_v26 = vpop.permute.xlu1 %52 }
  0x8f   :  { %vm61_vm2 = vcmp.eq.s32.totalorder %v1000_v28, %v53_v26 }
  0x92   :  { %v76_v27 = vpop.permute.xlu1 %75 }
  0x96   :  { %v69_v29 = vpop.permute.xlu1 %68 }
  0x97   :  { %v77_v30 = vsel %vm61_vm2, %v69_v29, 0.0 }
  0x98   :  { %v84_v31 = vrot.slane %v77_v30, 4 }
  0x9a   :  { %v85_v34 = vadd.f32 %v84_v31, %v77_v30  ;;  %v114_v53 = vpop.permute.xlu1 %113 }
  0x9c   :  { %v86_v38 = vrot.slane %v85_v34, 2 }
  0x9e   :  { %v87_v41 = vadd.f32 %v86_v38, %v85_v34  ;;  %v584_v34 = vld [vmem:[%s1084_s3] sm:$0x3] }
  0xa0   :  { %v88_v44 = vrot.slane %v87_v41, 1 }
  0xa2   :  { %v89_v49 = vadd.f32 %v88_v44, %v87_v41 }
  0xa5   :  { %v82_v32 = vpop.xlane.xlu0 %81 }
  0xa6   :  { %v83_v33 = vmax.f32 %v82_v32, 1.0  ;;  %v827_v32 = vld [vmem:[#allocation3 + $0xf0] sm:$0xff]  }
  0xa8   :  { %v97_v35 = vrot.slane %v83_v33, 1  ;;  %829 = vrcp.f32 %v83_v33  ;;  %v828_v33 = vld [vmem:[#allocation3 + $0xf8] sm:$0xff]  }
  0xa9   :  { %v60_v36 = vpop.permute.xlu0 %59 }
  0xaa   :  { %vm62_vm3 = vcmp.eq.s32.totalorder %v1000_v28, %v60_v36  ;;  %831 = vrcp.f32 %v97_v35  ;;  %v916_v35 = vmov 0   ;;  %v653_v36 = vld [vmem:[%s1086_s5 + $0x2] ss:$0 sm:$0xff] }
  0xab   :  { %v78_v37 = vsel %vm62_vm3, %v76_v27, 0.0  ;;  %796 = vset.pattern.permute.xlu0 %v916_v35 }
  0xac   :  { %v90_v39 = vrot.slane %v78_v37, 4  ;;  %586 = vperm.xlu0 %796, %v584_v34  }
  0xae   :  { %v91_v40 = vadd.f32 %v90_v39, %v78_v37 }
  0xb0   :  { %v92_v42 = vrot.slane %v91_v40, 2 }
  0xb2   :  { %v93_v43 = vadd.f32 %v92_v42, %v91_v40  ;;  %v830_v46 = vpop.eup %829 }
  0xb3   :  { %v101_v52 = vmul.f32 %v830_v46, %v89_v49 }
  0xb4   :  { %v94_v45 = vrot.slane %v93_v43, 1  ;;  %v832_v48 = vpop.eup %831 }
  0xb6   :  { %v95_v47 = vadd.f32 %v94_v45, %v93_v43  ;;  %v662_v45 = vld [vmem:[%s1086_s5 + $0x3] ss:$0 sm:$0xff]  ;;  %s917_s5 = smov [#allocation6]  }
  0xb7   :  { %s612_s26 = sshll.u32 %s917_s5, 4  ;;  %s613_s26 = int_to_ptr.vmem [resolvable:$true] %s612_s26 }
  0xb8   :  { %v103_v50 = vmul.f32 %v832_v48, %v95_v47  ;;  %s861_s27 = scalar_lea.vmem %s613_s26, 32  ;;  %p866_p9 = scmp.lt.s32.totalorder %s613_s26, %s613_s26 }
  0xb9   :  { %p862_p8 = scmp.ne.s32.totalorder %s613_s26, %s861_s27  ;;  %p867_p10 = scmp.lt.s32.totalorder %s861_s27, %s861_s27 }
  0xba   :  { %v106_v51 = vrot.slane %v103_v50, 7 }
  0xbb   :  { %p868_p11 = por %p867_p10, %p866_p9 }
  0xbc   :  { %v108_v54 = vsel %vm107_vm4, %v106_v51, %v101_v52 }
  0xbd   :  { %110 = vst [vmem:[#allocation2] sm:$0x3] %v108_v54  ;;  %p869_p12 = pnand %p868_p11, %p862_p8 }
  0xbe   :  { %117 = vst.msk [vmem:[#allocation2] sm:$0x3] %vm116_vm5, %v114_v53 }
  0xc5   :  { %v118_v55 = vld [vmem:[#allocation2] sm:$0x3] }
  0xc6   :  { %v119_v56 = vpack.c.bf16 %v118_v55, %v118_v55 }
  0xc8   :  { %725 = vmatmul.mubr.bf16.vlgmr.msra.gmra.mrb[0].mxu0 %v119_v56 }
  0xc9   :  { %764 = vmatprep.mubr.msk.bf16.mxu0 %vm915_vm1, %v914_v13  ;;  %749 = vmatpush3.bf16.msra.mxu0 %v813_v61 }
  0xca   :  { %750 = vmatprep.subr.bf16.mxu0 %v914_v13 }
  0xcd   :  { %751 = vmatpush3.bf16.msra.mxu0 %v814_v62 }
  0xce   :  { %752 = vmatprep.subr.bf16.mxu0 %v914_v13 }
  0xd1   :  { %753 = vmatpush3.bf16.msra.mxu0 %v815_v63 }
  0xd2   :  { %754 = vmatprep.subr.bf16.mxu0 %v914_v13 }
  0xd5   :  { %755 = vmatpush3.bf16.msra.mxu0 %v816_v0 }
  0xd6   :  { %756 = vmatprep.subr.bf16.mxu0 %v914_v13 }
  0xd9   :  { %757 = vmatpush3.bf16.msra.mxu0 %v817_v1 }
  0xda   :  { %758 = vmatprep.subr.bf16.mxu0 %v914_v13 }
  0xdd   :  { %759 = vmatpush3.bf16.msra.mxu0 %v818_v2 }
  0xde   :  { %760 = vmatprep.subr.bf16.mxu0 %v914_v13 }
  0xe1   :  { %761 = vmatpush3.bf16.msra.mxu0 %v819_v14 }
  0xe2   :  { %762 = vmatprep.subr.bf16.mxu0 %v914_v13 }
  0xe5   :  { %763 = vmatpush3.bf16.msra.mxu0 %v820_v15 }
 0x12b   :  { %v587_v44 = vpop.permute.xlu0 %586 }
 0x12c   :  { %vm588_vm7 = vcmp.eq.s32.totalorder %v1000_v28, %v587_v44 }
 0x12d   :  { %v671_v47 = vsel %vm588_vm7, 1.0, %v914_v13 }
 0x19b   :  { %v223_v4 = vpop.f32.mrb[0].mxu0 }
 0x19c   :  { %v224_v5 = vadd.f32 %v635_v3, %v223_v4  ;;  %v726_v6 = vpop.f32.mrb[1].mxu0 }
 0x19d   :  { %v226_v7 = vpop.f32.mrb[2].mxu0 }
 0x19e   :  { %833 = vtanh.f32 %v224_v5  ;;  %v727_v8 = vpop.f32.mrb[3].mxu0  ;;  %v231_v9 = vmax.f32 %v224_v5, 0.0 }
 0x1a8   :  { %v834_v10 = vpop.eup %833 }
 0x1a9   :  { %v232_v11 = vsel %vm229_vm6, %v834_v10, %v231_v9 }
 0x1aa   :  { %v233_v12 = vpack.c.bf16 %v232_v11, %v232_v11 }
 0x1ac   :  { %745 = vmatmul.mubr.bf16.vlgmr.msra.gmra.mrb[0].mxu1 %v233_v12 }
 0x1ad   :  { %784 = vmatprep.mubr.msk.bf16.mxu1 %vm915_vm1, %v914_v13  ;;  %769 = vmatpush3.bf16.msra.mxu1 %v821_v16 }
 0x1ae   :  { %770 = vmatprep.subr.bf16.mxu1 %v914_v13 }
 0x1b1   :  { %771 = vmatpush3.bf16.msra.mxu1 %v822_v17 }
 0x1b2   :  { %772 = vmatprep.subr.bf16.mxu1 %v914_v13 }
 0x1b5   :  { %773 = vmatpush3.bf16.msra.mxu1 %v823_v18 }
 0x1b6   :  { %774 = vmatprep.subr.bf16.mxu1 %v914_v13 }
 0x1b9   :  { %775 = vmatpush3.bf16.msra.mxu1 %v824_v19 }
 0x1ba   :  { %776 = vmatprep.subr.bf16.mxu1 %v914_v13 }
 0x1bd   :  { %777 = vmatpush3.bf16.msra.mxu1 %v825_v20 }
 0x1be   :  { %778 = vmatprep.subr.bf16.mxu1 %v914_v13 }
 0x1c1   :  { %779 = vmatpush3.bf16.msra.mxu1 %v826_v21 }
 0x1c2   :  { %780 = vmatprep.subr.bf16.mxu1 %v914_v13 }
 0x1c5   :  { %781 = vmatpush3.bf16.msra.mxu1 %v827_v32 }
 0x1c6   :  { %782 = vmatprep.subr.bf16.mxu1 %v914_v13 }
 0x1c9   :  { %783 = vmatpush3.bf16.msra.mxu1 %v828_v33 }
 0x27f   :  { %v337_v23 = vpop.f32.mrb[0].mxu1 }
 0x280   :  { %v338_v24 = vadd.f32 %v644_v22, %v337_v23  ;;  %v746_v25 = vpop.f32.mrb[1].mxu1 }
 0x281   :  { %v340_v26 = vpop.f32.mrb[2].mxu1 }
 0x282   :  { %v343_v27 = vmax.f32 %v338_v24, 0.0  ;;  %v747_v29 = vpop.f32.mrb[3].mxu1 }
 0x284   :  { %v344_v30 = vsel %vm229_vm6, %v338_v24, %v343_v27 }
 0x285   :  { %v345_v31 = vpack.c.bf16 %v344_v30, %v344_v30 }
 0x287   :  { %765 = vmatmul.mubr.bf16.vlgmr.msra.gmra.mrb[4].mxu0 %v345_v31 }
 0x35a   :  { %v449_v37 = vpop.f32.mrb[4].mxu0 }
 0x35b   :  { %v450_v38 = vadd.f32 %v653_v36, %v449_v37  ;;  %v766_v39 = vpop.f32.mrb[5].mxu0 }
 0x35c   :  { %v452_v40 = vpop.f32.mrb[6].mxu0 }
 0x35d   :  { %v455_v41 = vmax.f32 %v450_v38, 0.0  ;;  %v767_v42 = vpop.f32.mrb[7].mxu0 }
 0x35f   :  { %v456_v43 = vpack.c.bf16 %v455_v41, %v455_v41 }
 0x361   :  { %785 = vmatmul.mubr.bf16.vlgmr.msra.gmra.mrb[4].mxu1 %v456_v43 }
 0x434   :  { %v560_v46 = vpop.f32.mrb[4].mxu1 }
 0x435   :  { %v561_v48 = vadd.f32 %v662_v45, %v560_v46  ;;  %v786_v49 = vpop.f32.mrb[5].mxu1 }
 0x436   :  { %v563_v50 = vpop.f32.mrb[6].mxu1 }
 0x437   :  { %v787_v51 = vpop.f32.mrb[7].mxu1  ;;  %v569_v52 = vsel %vm568_vm8, %v561_v48, -1e+30  ;;  %567 = vst.msk [vmem:[#allocation6] sm:$0x3] %vm566_vm9, %v561_v48  ;;  %v591_v54 = vmul.f32 %v671_v47, %v561_v48 }
 0x438   :  { %v571_v53 = vsel %vm570_vm10, %v569_v52, -inf }
 0x439   :  { %572 = vmax.xlane.f32.xlu1 %v571_v53  ;;  %v592_v55 = vsel %vm570_vm10, %v591_v54, 0.0 }
 0x43d   :  { %593 = vadd.xlane.f32.xlu1 %v592_v55 }
 0x4c6   :  { %v573_v56 = vpop.xlane.xlu1 %572 }
 0x4c7   :  { %v574_v57 = vsub.f32 %v569_v52, %v573_v56 }
 0x4c9   :  { %v575_v58 = vmul.f32 1.442695, %v574_v57 }
 0x4cb   :  { %835 = vpow2.f32 %v575_v58 }
 0x4d5   :  { %v836_v13 = vpop.eup %835 }
 0x4d6   :  { %v577_v59 = vsel %vm568_vm8, %v836_v13, 0.0 }
 0x4d7   :  { %v578_v60 = vsel %vm570_vm10, %v577_v59, 0.0 }
 0x4d8   :  { %579 = vadd.xlane.f32.xlu0 %v578_v60 }
 0x4d9   :  { %872 = shalt.err (!%p869_p12)
}
 0x4da   :  { %s873_s30 = scalar_lea.hbm %s1087_s6, 32 }
 0x4db   :  { %p874_p13 = scmp.ne.s32.totalorder %s1087_s6, %s873_s30  ;;  %p877_p0 = scmp.lt.u32.totalorder %s873_s30, %s1087_s6 }
 0x4dd   :  { %p879_p1 = pnand %p877_p0, %p874_p13 }
 0x4df   :  { %882 = shalt.err (!%p879_p1)
}
 0x4e0   :  { %615 = dma.vmem_to_hbm [thread:$0]  %s613_s26, 32, %s1087_s6, [#allocation5]   ;;  %v594_v0 = vpop.xlane.xlu1 %593  ;;  %vm604_vm11 = vcmask 0  }
 0x4e1   :  { %s918_s14 = smov [#allocation7]  }
 0x4e2   :  { %s622_s15 = sshll.u32 %s918_s14, 4  ;;  %s623_s15 = int_to_ptr.vmem [resolvable:$true] %s622_s15 }
 0x4e3   :  { %s883_s6 = scalar_lea.vmem %s623_s15, 16  ;;  %s887_s16 = scalar_lea.vmem %s623_s15, 32 }
 0x4e4   :  { %p884_p2 = scmp.ne.s32.totalorder %s623_s15, %s883_s6  ;;  %p888_p3 = scmp.lt.s32.totalorder %s623_s15, %s623_s15 }
 0x4e5   :  { %p889_p4 = scmp.lt.s32.totalorder %s887_s16, %s883_s6 }
 0x4e7   :  { %p890_p5 = por %p889_p4, %p888_p3 }
 0x4e9   :  { %p891_p6 = pnand %p890_p5, %p884_p2 }
 0x565   :  { %v580_v28 = vpop.xlane.xlu0 %579 }
 0x566   :  { %837 = vlog2.f32 %v580_v28 }
 0x570   :  { %v838_v61 = vpop.eup %837 }
 0x571   :  { %v582_v62 = vmul.f32 0.6931472, %v838_v61 }
 0x573   :  { %v583_v63 = vadd.f32 %v582_v62, %v573_v56 }
 0x575   :  { %v595_v1 = vsub.f32 %v583_v63, %v594_v0 }
 0x577   :  { %v596_v2 = vsel %vm570_vm10, %v595_v1, 0.0 }
 0x578   :  { %v597_v3 = vrot.slane %v596_v2, 4 }
 0x57a   :  { %v598_v4 = vadd.f32 %v597_v3, %v596_v2 }
 0x57c   :  { %v599_v5 = vrot.slane %v598_v4, 2 }
 0x57e   :  { %v600_v6 = vadd.f32 %v599_v5, %v598_v4 }
 0x580   :  { %v601_v7 = vrot.slane %v600_v6, 1 }
 0x582   :  { %v602_v8 = vadd.f32 %v601_v7, %v600_v6 }
 0x584   :  { %v603_v9 = vmul.f32 0.5, %v602_v8 }
 0x586   :  { %605 = vst.msk [vmem:[#allocation7] sm:$0x1] %vm604_vm11, %v603_v9 }
 0x587   :  { %894 = shalt.err (!%p891_p6)
}
 0x588   :  { %s895_s4 = scalar_lea.hbm %s1088_s7, 16 }
 0x589   :  { %p896_p7 = scmp.ne.s32.totalorder %s1088_s7, %s895_s4  ;;  %p899_p8 = scmp.lt.u32.totalorder %s895_s4, %s1088_s7 }
 0x58b   :  { %p901_p9 = pnand %p899_p8, %p896_p7 }
 0x58d   :  { %904 = shalt.err (!%p901_p9)
}
 0x58e   :  { %625 = dma.vmem_to_hbm [thread:$0]  %s623_s15, 16, %s1088_s7, [#allocation8]  }
 0x58f   :  { %907 = dma.done.wait [#allocation5], 32  }
 0x590   :  { %908 = vsyncadd [#allocation5], 4294967264 }
 0x591   :  { %909 = dma.done.wait [#allocation8], 16  }
 0x592   :  { %910 = vsyncadd [#allocation8], 4294967280 }
 0x593   :  { %632 = vsyncpa [#allocation4], 1 }
 0x594   :  { %633 = vsyncpa [#allocation5], 1 }
 0x595   :  { %634 = vsyncpa [#allocation8], 1 }

</bundles_post_ra>
